<compile_context>
chip_gen: v6e
topology: v6e:2x2x1
jax: 0.10.0
libtpu: 0.0.40
codegen_flags: <defaults>
</compile_context>

<pallas_src>
import functools

import jax
import jax.numpy as jnp
from jax.experimental import pallas as pl
from jax.experimental.pallas import tpu as pltpu


def _round_up(x: int, m: int) -> int:
    return ((x + m - 1) // m) * m


def _vmem_capacity_bytes() -> int:
    """Generation-aware VMEM capacity; conservative 64 MiB if query fails."""
    default = 64 * 1024 * 1024
    try:
        info = pltpu.get_tpu_info()
    except Exception:
        return default
    for attr in ("vmem_capacity_bytes", "vmem_size_bytes", "vmem_bytes"):
        val = getattr(info, attr, None)
        if val:
            return int(val)
    return default


def _fits(tt: int, tn: int, c_pad: int, budget: int) -> bool:
    x_buf = 2 * tt * c_pad * 2            # bf16 input, double-buffered
    o_buf = 2 * tt * tn * 2               # bf16 output, double-buffered
    # TODO(synk): weight block index is constant over the inner loop; with
    # pipeline_mode=pl.Buffered(1) this could be counted single-buffered.
    w_buf = 2 * (2 * c_pad) * tn * 2      # bf16 weight, counted double-buffered
    carry = tt * tn * 4                   # f32 carry scratch
    work = 3 * tt * tn * 4                # f32 accumulators / roll workspace
    return x_buf + o_buf + w_buf + carry + work <= budget


def _choose_tiles(T: int, c_pad: int, budget: int):
    """Prefer a fully resident weight (tn == c_pad); within that, max T tile."""
    tt_max = min(512, _round_up(max(T, 1), 8))
    tt_cands = [t for t in (512, 256, 128, 64, 32, 16, 8) if t <= tt_max] or [8]
    tn_cands = []
    for t in (c_pad, 512, 256, 128):
        if t <= c_pad and c_pad % t == 0 and t not in tn_cands:
            tn_cands.append(t)
    for tn in tn_cands:
        for tt in tt_cands:
            if _fits(tt, tn, c_pad, budget):
                return tt, tn
    return tt_cands[-1], tn_cands[-1]     # may spill, still correct


def _short_mem_kernel(x_ref, wt_ref, o_ref, carry_ref, *, c_pad, shift, t_axis):
    # x_ref:     (1, tt, C_pad) bf16  current activations
    # wt_ref:    (2*C_pad, tn)  bf16  pre-transposed weight slice [W1; W2]
    # o_ref:     (1, tt, tn)    bf16
    # carry_ref: (tt, tn)       f32   previous tile's x @ W1 (same sequence)
    i = pl.program_id(t_axis)

    @pl.when(i == 0)                       # start of a sequence: no history
    def _():
        carry_ref[...] = jnp.zeros_like(carry_ref)

    x = x_ref[0]                           # (tt, C_pad) bf16
    w1 = wt_ref[0:c_pad, :]                # (C_pad, tn) — static slice, free
    w2 = wt_ref[c_pad:, :]                 # (C_pad, tn)

    acc1 = jnp.dot(x, w1, preferred_element_type=jnp.float32)   # (tt, tn)
    acc2 = jnp.dot(x, w2, preferred_element_type=jnp.float32)   # (tt, tn)

    # Shift acc1 down by `shift` rows; rows entering from "above" come from the
    # previous tile's acc1 (carry).  Only 32-bit data is rotated (safe layout).
    tt = acc1.shape[0]
    row = jax.lax.broadcasted_iota(jnp.int32, acc1.shape, 0)
    prev = carry_ref[...]                  # read carry before overwriting it
    mixed = jnp.where(row >= tt - shift, prev, acc1)
    shifted_acc1 = pltpu.roll(mixed, shift=shift, axis=0)
    carry_ref[...] = acc1                  # carry for the next T tile

    acc = shifted_acc1 + acc2
    # sigmoid(z) = 0.5 * (tanh(z/2) + 1): single EUP transcendental per element.
    o_ref[0] = (0.5 * (jnp.tanh(0.5 * acc) + 1.0)).astype(o_ref.dtype)


def prepare_weight(w):
    """One-time init: nn.Linear weight (C, 2C) -> padded, pre-transposed
    (2*C_pad, C_pad) bf16 with C_pad = round_up(C, 128) (lane-dense stores)."""
    w = jnp.asarray(w).astype(jnp.bfloat16)
    C = w.shape[0]
    assert w.shape == (C, 2 * C), f"expected (C, 2C) weight, got {w.shape}"
    c_pad = _round_up(C, 128)
    pad = ((0, c_pad - C), (0, c_pad - C))
    w1t = jnp.pad(w[:, :C].T, pad)         # shifted-x branch
    w2t = jnp.pad(w[:, C:].T, pad)         # current-x branch
    return jnp.concatenate([w1t, w2t], axis=0)   # (2*C_pad, C_pad)


def short_mem(x, wt, *, shift: int = 1):
    """x: (B, T, C); wt: (2*C_pad, C_pad) from prepare_weight(). Returns (B, T, C) bf16."""
    B, T, C = x.shape
    c_pad = _round_up(C, 128)
    assert wt.shape == (2 * c_pad, c_pad), (
        f"expected prepared weight (2*C_pad, C_pad)={(2 * c_pad, c_pad)}, got {wt.shape}")
    assert shift >= 1
    x = x.astype(jnp.bfloat16)
    wt = wt.astype(jnp.bfloat16)

    if c_pad != C:                          # lane-dense channel padding (zeros)
        x = jnp.pad(x, ((0, 0), (0, 0), (0, c_pad - C)))

    vmem_cap = _vmem_capacity_bytes()
    vmem_limit = min(int(vmem_cap * 0.75), 128 * 1024 * 1024)
    budget = int(vmem_limit * 0.85)

    tt, tn = _choose_tiles(T, c_pad, budget)
    # TODO(synk): shift amounts larger than one T tile would need a deeper carry.
    assert shift <= tt, f"shift={shift} must be <= T tile {tt}"

    t_pad = _round_up(T, tt)
    if t_pad != T:                          # zero pad at the END of each sequence
        x = jnp.pad(x, ((0, 0), (0, t_pad - T), (0, 0)))

    n_t = t_pad // tt
    n_n = c_pad // tn

    if n_n == 1:
        # Whole weight resident in VMEM: activations read exactly once.
        grid = (B, n_t)
        t_axis = 1
        in_specs = [
            pl.BlockSpec((1, tt, c_pad), lambda b, i: (b, i, 0)),
            pl.BlockSpec((2 * c_pad, c_pad), lambda b, i: (0, 0)),
        ]
        out_spec = pl.BlockSpec((1, tt, c_pad), lambda b, i: (b, i, 0))
        dims = ("parallel", "arbitrary")
    else:
        # Very large C: tile the output channels; weight slice j stays resident
        # across the whole (b, t) inner loops (j outermost).
        grid = (n_n, B, n_t)
        t_axis = 2
        in_specs = [
            pl.BlockSpec((1, tt, c_pad), lambda j, b, i: (b, i, 0)),
            pl.BlockSpec((2 * c_pad, tn), lambda j, b, i: (0, j)),
        ]
        out_spec = pl.BlockSpec((1, tt, tn), lambda j, b, i: (b, i, j))
        dims = ("parallel", "parallel", "arbitrary")
    # NOTE: the T axis must stay "arbitrary" (sequential) for the carry; on v7x
    # megacore the batch axis is the sharded one, so odd/small B limits balance.

    m_pad = B * t_pad
    flops = 4 * m_pad * c_pad * c_pad                       # two GEMMs
    transcendentals = m_pad * c_pad                         # one tanh / element
    bytes_accessed = 2 * (m_pad * c_pad * n_n               # x read (per N tile)
                          + m_pad * c_pad                   # output write
                          + 2 * c_pad * c_pad)              # weight
    cost = pl.CostEstimate(flops=flops, transcendentals=transcendentals,
                           bytes_accessed=bytes_accessed)

    kernel = functools.partial(_short_mem_kernel, c_pad=c_pad, shift=shift,
                               t_axis=t_axis)
    out = pl.pallas_call(
        kernel,
        out_shape=jax.ShapeDtypeStruct((B, t_pad, c_pad), jnp.bfloat16),
        grid_spec=pltpu.PrefetchScalarGridSpec(
            num_scalar_prefetch=0,
            grid=grid,
            in_specs=in_specs,
            out_specs=out_spec,
            scratch_shapes=[pltpu.VMEM((tt, tn), jnp.float32)],
        ),
        compiler_params=pltpu.CompilerParams(
            dimension_semantics=dims,
            vmem_limit_bytes=vmem_limit,
        ),
        cost_estimate=cost,
    )(x, wt)

    return out[:, :T, :C]


def short_mem_ref(x, w, *, shift: int = 1):
    """Pure-JAX reference matching the PyTorch forward (w is the raw (C, 2C) weight)."""
    x = x.astype(jnp.bfloat16)
    shifted = jnp.pad(x, ((0, 0), (shift, 0), (0, 0)))[:, :x.shape[1], :]
    ct = jnp.concatenate([shifted, x], axis=-1)
    y = jnp.dot(ct, w.T.astype(jnp.bfloat16), preferred_element_type=jnp.float32)
    return jax.nn.sigmoid(y).astype(jnp.bfloat16)


if __name__ == "__main__":
    key = jax.random.PRNGKey(0)
    kx, kw, kx2 = jax.random.split(key, 3)

    # Shapes implied by the module: micro_bsz=2, seq=8, n_embd=32.
    B, T, C = 2, 8, 32
    x = jax.random.normal(kx, (B, T, C), dtype=jnp.float32).astype(jnp.bfloat16)
    w = (jax.random.normal(kw, (C, 2 * C), dtype=jnp.float32)
         * (1.0 / jnp.sqrt(2.0 * C))).astype(jnp.bfloat16)
    wt = prepare_weight(w)                  # one-time pad + transpose at init

    out = jax.block_until_ready(short_mem(x, wt, shift=1))
    ref = short_mem_ref(x, w, shift=1)
    assert out.shape == (B, T, C) and out.dtype == jnp.bfloat16
    assert jnp.allclose(out.astype(jnp.float32), ref.astype(jnp.float32),
                        atol=2e-2, rtol=2e-2)

    # Second check: multi-tile T (exercises the cross-tile carry) and shift=2.
    T2 = 40
    x2 = jax.random.normal(kx2, (B, T2, C), dtype=jnp.float32).astype(jnp.bfloat16)
    out2 = jax.block_until_ready(short_mem(x2, wt, shift=2))
    ref2 = short_mem_ref(x2, w, shift=2)
    assert out2.shape == (B, T2, C) and out2.dtype == jnp.bfloat16
    assert jnp.allclose(out2.astype(jnp.float32), ref2.astype(jnp.float32),
                        atol=2e-2, rtol=2e-2)

    print("KERNEL_OK")
</pallas_src>

<mosaic_0001>
module attributes {stable_mosaic.version = 11 : i64} {
  func.func @_short_mem_kernel(%arg0: i32, %arg1: i32, %arg2: memref<1x8x128xbf16, #tpu.memory_space<vmem>>, %arg3: memref<256x128xbf16, #tpu.memory_space<vmem>>, %arg4: memref<1x8x128xbf16, #tpu.memory_space<vmem>>, %arg5: memref<8x128xf32, #tpu.memory_space<vmem>>) attributes {dimension_semantics = [#tpu.dimension_semantics<parallel>, #tpu.dimension_semantics<arbitrary>], iteration_bounds = array<i64: 2, 1>, scalar_prefetch = 0 : i64, scratch_operands = 1 : i64, tpu.core_type = #tpu.core_type<tc>, window_params = [{transform_indices = @transform_0, window_bounds = array<i64: 1, 8, 128>}, {pipeline_mode = #tpu.pipeline_mode<synchronous>, transform_indices = @transform_1, window_bounds = array<i64: 256, 128>}, {transform_indices = @transform_2, window_bounds = array<i64: 1, 8, 128>}]} {
    %c0_i32 = arith.constant 0 : i32
    %0 = arith.cmpi eq, %arg1, %c0_i32 : i32
    %1 = arith.extui %0 : i1 to i32
    %c0_i32_0 = arith.constant 0 : i32
    %2 = arith.cmpi ne, %1, %c0_i32_0 : i32
    scf.if %2 {
      %cst_17 = arith.constant 0.000000e+00 : f32
      %28 = vector.broadcast %cst_17 : f32 to vector<8x128xf32>
      %c0_18 = arith.constant 0 : index
      %c0_19 = arith.constant 0 : index
      %29 = vector.load %arg5[%c0_18, %c0_19] : memref<8x128xf32, #tpu.memory_space<vmem>>, vector<8x128xf32>
      tpu.vector_store %arg5[%c0_18, %c0_19], %28 {strides = array<i32>} : memref<8x128xf32, #tpu.memory_space<vmem>>, vector<8x128xf32>,
    } else {
    }
    %c0 = arith.constant 0 : index
    %c0_1 = arith.constant 0 : index
    %c0_2 = arith.constant 0 : index
    %3 = vector.load %arg2[%c0, %c0_1, %c0_2] : memref<1x8x128xbf16, #tpu.memory_space<vmem>>, vector<1x8x128xbf16>
    %4 = vector.shape_cast %3 : vector<1x8x128xbf16> to vector<8x128xbf16>
    %c0_3 = arith.constant 0 : index
    %c0_4 = arith.constant 0 : index
    %5 = vector.load %arg3[%c0_3, %c0_4] : memref<256x128xbf16, #tpu.memory_space<vmem>>, vector<128x128xbf16>
    %c128 = arith.constant 128 : index
    %c0_5 = arith.constant 0 : index
    %6 = vector.load %arg3[%c128, %c0_5] : memref<256x128xbf16, #tpu.memory_space<vmem>>, vector<128x128xbf16>
    %cst = arith.constant dense<0.000000e+00> : vector<8x128xf32>
    %7 = tpu.matmul %4, %5, %cst {dimension_numbers = #tpu.dot_dimension_numbers<[1], [0], [0], [1], [0, 0, 1, 1], [], []>} : vector<8x128xbf16>, vector<128x128xbf16>, vector<8x128xf32> -> vector<8x128xf32>
    %cst_6 = arith.constant dense<0.000000e+00> : vector<8x128xf32>
    %8 = tpu.matmul %4, %6, %cst_6 {dimension_numbers = #tpu.dot_dimension_numbers<[1], [0], [0], [1], [0, 0, 1, 1], [], []>} : vector<8x128xbf16>, vector<128x128xbf16>, vector<8x128xf32> -> vector<8x128xf32>
    %9 = tpu.iota {dimensions = array<i32: 0>} : vector<8x128xi32>
    %c0_7 = arith.constant 0 : index
    %c0_8 = arith.constant 0 : index
    %10 = vector.load %arg5[%c0_7, %c0_8] : memref<8x128xf32, #tpu.memory_space<vmem>>, vector<8x128xf32>
    %c7_i32 = arith.constant 7 : i32
    %11 = vector.broadcast %c7_i32 : i32 to vector<8x128xi32>
    %12 = arith.cmpi sge, %9, %11 : vector<8x128xi32>
    %13 = arith.select %12, %10, %7 : vector<8x128xi1>, vector<8x128xf32>
    %c1_i32 = arith.constant 1 : i32
    %14 = tpu.dynamic_rotate %13 by %c1_i32 dim 0 : vector<8x128xf32>, i32 -> vector<8x128xf32>
    %c0_9 = arith.constant 0 : index
    %c0_10 = arith.constant 0 : index
    %15 = vector.load %arg5[%c0_9, %c0_10] : memref<8x128xf32, #tpu.memory_space<vmem>>, vector<8x128xf32>
    tpu.vector_store %arg5[%c0_9, %c0_10], %7 {strides = array<i32>} : memref<8x128xf32, #tpu.memory_space<vmem>>, vector<8x128xf32>,
    %16 = arith.addf %14, %8 : vector<8x128xf32>
    %cst_11 = arith.constant 5.000000e-01 : f32
    %17 = vector.broadcast %cst_11 : f32 to vector<8x128xf32>
    %18 = arith.mulf %17, %16 : vector<8x128xf32>
    %19 = math.tanh %18 : vector<8x128xf32>
    %cst_12 = arith.constant 1.000000e+00 : f32
    %20 = vector.broadcast %cst_12 : f32 to vector<8x128xf32>
    %21 = arith.addf %19, %20 : vector<8x128xf32>
    %cst_13 = arith.constant 5.000000e-01 : f32
    %22 = vector.broadcast %cst_13 : f32 to vector<8x128xf32>
    %23 = arith.mulf %22, %21 : vector<8x128xf32>
    %24 = arith.truncf %23 : vector<8x128xf32> to vector<8x128xbf16>
    %c0_14 = arith.constant 0 : index
    %c0_15 = arith.constant 0 : index
    %c0_16 = arith.constant 0 : index
    %25 = vector.load %arg4[%c0_14, %c0_15, %c0_16] : memref<1x8x128xbf16, #tpu.memory_space<vmem>>, vector<1x8x128xbf16>
    %26 = vector.shape_cast %25 : vector<1x8x128xbf16> to vector<8x128xbf16>
    %27 = vector.shape_cast %24 : vector<8x128xbf16> to vector<1x8x128xbf16>
    tpu.vector_store %arg4[%c0_14, %c0_15, %c0_16], %27 {strides = array<i32>} : memref<1x8x128xbf16, #tpu.memory_space<vmem>>, vector<1x8x128xbf16>,
    return
  }
  func.func @transform_0(%arg0: i32, %arg1: i32) -> (i32, i32, i32) {
    %c0_i32 = arith.constant 0 : i32
    %c0_i32_0 = arith.constant 0 : i32
    return %arg0, %arg1, %c0_i32 : i32, i32, i32
  }
  func.func @transform_1(%arg0: i32, %arg1: i32) -> (i32, i32) {
    %c0_i32 = arith.constant 0 : i32
    %c0_i32_0 = arith.constant 0 : i32
    %c0_i32_1 = arith.constant 0 : i32
    return %c0_i32, %c0_i32_0 : i32, i32
  }
  func.func @transform_2(%arg0: i32, %arg1: i32) -> (i32, i32, i32) {
    %c0_i32 = arith.constant 0 : i32
    %c0_i32_0 = arith.constant 0 : i32
    return %arg0, %arg1, %c0_i32 : i32, i32, i32
  }
}

</mosaic_0001>

<bundles_post_ra>
// kernel: tpu_custom_call.1
= control target key start
LH: loop header
LB: loop body
LE: loop exit
PB: predicated region body
PF: predicated region fallthrough
CT: control target
= control target key end

     0   :  { %7 = vsyncpa [#allocation4], 0  ;;  %s1045_s0 = inlined_call_operand.hbm [shape: bf16[2,8,128], index: 0, kind: input, shape index: {}]   ;;  %s1046_s1 = inlined_call_operand.hbm [shape: bf16[256,128], index: 1, kind: input, shape index: {}]   ;;  %s1047_s2 = inlined_call_operand.hbm [shape: bf16[2,8,128], index: 2, kind: output, shape index: {}]  }
   0x1   :  { %9 = vsyncpa [#allocation4 + $0x1], 0 }
   0x2   :  { %10 = vsyncpa [#allocation7], 0 }
   0x3   :  { %11 = vsyncpa [#allocation5], 0 }
   0x4   :  { %13 = vsyncpa [#allocation5 + $0x1], 0  ;;  %s871_s9 = smov 0   ;;  %s873_s10 = smov 0  }
   0x5   :  { %s875_s11 = smov 0   ;;  %s877_s12 = smov 0  }
   0x6   :  { %s879_s13 = smov 0   ;;  %s881_s14 = smov 0  }
   0x7 LB: > { %s525_s15 = sadd.s32 4294967295, %s847_s14   ;;  %s526_s16 = sadd.s32 4294967294, %s847_s14   ;;  %s847_s14 = sphi %s881_s14, %s19_s14   ;;  %s843_s13 = sphi %s879_s13, %s1065_s13   ;;  %s839_s12 = sphi %s877_s12, %s1064_s12   ;;  %s835_s11 = sphi %s875_s11, %s1063_s11   ;;  %s831_s10 = sphi %s873_s10, %s1062_s10   ;;  %s827_s9 = sphi %s871_s9, %s1061_s9  }
   0x8   : > { %p53_p0 = scmp.ne.s32.totalorder %s831_s10, %s827_s9  ;;  %p905_p1 = scmp.eq.s32.totalorder %s525_s15, 0 }
   0x9   : > { %p909_p2 = scmp.eq.s32.totalorder %s525_s15, 1  ;;  %p106_p3 = scmp.eq.s32.totalorder %s526_s16, 1 }
   0xa   : > { %p915_p4 = por %p905_p1, %p53_p0  ;;  %p527_p5 = scmp.ge.s32.totalorder %s847_s14, 1 }
   0xb   : > { %p920_p6 = por %p106_p3, %p53_p0  ;;  %p113_p7 = scmp.lt.s32.totalorder %s847_s14, 3 }
   0xc   : > { %s1051_s19 = scalar_select %p915_p4, 1, 0 }
   0xd   : > { %s1052_s20 = scalar_select %p920_p6, 1, 0 }
   0xe   : > { %p925_p8 = pnand %p527_p5, %p113_p7  ;;  %s849_s22 = smov [#allocation6]  }
   0xf   : > { %s125_s23 = sshll.u32 %s849_s22, 4  ;;  %s31_s25 = sadd.s32 1, %s843_s13  ;;  %s126_s23 = int_to_ptr.vmem [resolvable:$true] %s125_s23 }
  0x10   : > { %p622_p9 = pneg %p925_p8  ;;  %s720_s26 = scalar_lea.vmem %s126_s23, 2048 }
  0x11   : > { %p721_p13 = scmp.ne.s32.totalorder %s126_s23, %s720_s26  ;;  %p728_p5 = scmp.lt.s32.totalorder %s126_s23, %s126_s23 }
  0x12   : > { %p934_p11 = pnand %p622_p9, %p905_p1  ;;  %p729_p7 = scmp.lt.s32.totalorder %s720_s26, %s720_s26 }
  0x14   : > { %p711_p12 = pneg %p934_p11  ;;  %p730_p6 = por %p729_p7, %p728_p5 }
  0x16   : > { %p723_p0 = pnand %p721_p13, %p711_p12 }
  0x18   : > { %p724_p3 = pneg %p723_p0 }
  0x1a   : > { %p731_p4 = pnand %p730_p6, %p724_p3 }
  0x1c   : > { %734 = shalt.err (!%p731_p4)
}
  0x1d   : > { %s850_s27 = smov 64   ;;  %s851_s28 = smov 4  }
  0x1e   : > { %625 = dma.hbm_to_vmem [thread:$0]  (!%p934_p11), %s1046_s1, 2048, %s126_s23, [#allocation7], %s850_s27, %s850_s27, %s851_s28  }
  0x1f   : > { %p33_p6 = scmp.ge.s32.totalorder %s31_s25, 2  ;;  %s40_s3 = sadd.s32 1, %s835_s11 }
  0x20   : > { %p47_p4 = scmp.ne.s32.totalorder %s835_s11, %s831_s10  ;;  %p48_p9 = scmp.eq.s32.totalorder %s847_s14, 0 }
  0x21   : > { %s1067_s25 = smov (%p33_p6, %s31_s25), 0  ;;  %p635_p0 = scmp.lt.s32.totalorder %s847_s14, 2 }
  0x22   : > { %p952_p12 = por %p48_p9, %p47_p4  ;;  %p958_p13 = por %p909_p2, %p47_p4 }
  0x23   : > { %s35_s6 = ssub.s32 %s843_s13, %s1067_s25  ;;  %s139_s7 = sand.u32 1, %s835_s11  }
  0x24   : > { %p38_p11 = scmp.eq.s32.totalorder %s35_s6, 0  ;;  %s530_s8 = sshll.u32 %s139_s7, 2 }
  0x25   : > { %s531_s16 = sshll.u32 %s843_s13, 6  ;;  %s143_s26 = scalar_lea.vmem [#allocation3], %s530_s8 }
  0x26   : > { %s967_s15 = scalar_select %p38_p11, %s835_s11, %s40_s3  }
  0x27   : > { %s149_s24 = scalar_lea.hbm %s1045_s0, %s531_s16  ;;  %s151_s27 = sshll.u32 %s143_s26, 4  ;;  %s152_s27 = int_to_ptr.vmem [resolvable:$true] %s151_s27 }
  0x28   : > { %p975_p2 = pnand %p635_p0, %p952_p12  ;;  %s140_s28 = scalar_lea.sflag [#allocation4], %s139_s7 }
  0x29   : > { %s748_s29 = scalar_lea.vmem %s152_s27, 64  ;;  %s852_s30 = smov [#allocation3]  }
  0x2a   : > { %p737_p3 = pneg %p975_p2  ;;  %p749_p5 = scmp.ne.s32.totalorder %s152_s27, %s748_s29 }
  0x2b   : > { %s753_s3 = sshll.u32 %s852_s30, 4  ;;  %s754_s3 = int_to_ptr.vmem [resolvable:$false] %s753_s3 }
  0x2c   : > { %p751_p7 = pnand %p749_p5, %p737_p3  ;;  %s755_s6 = scalar_lea.vmem %s754_s3, 128 }
  0x2d   : > { %p756_p4 = scmp.lt.s32.totalorder %s152_s27, %s754_s3  ;;  %p757_p9 = scmp.lt.s32.totalorder %s755_s6, %s748_s29 }
  0x2e   : > { %p752_p6 = pneg %p751_p7 }
  0x2f   : > { %p758_p11 = por %p757_p9, %p756_p4 }
  0x31   : > { %p759_p10 = pnand %p758_p11, %p752_p6 }
  0x33   : > { %762 = shalt.err (!%p759_p10)
}
  0x34   : > { %629 = dma.hbm_to_vmem [thread:$0]  (!%p975_p2), %s149_s24, 64, %s152_s27, %s140_s28  }
  0x35   : > { %160 = sbr.rel (%p925_p8) target bundleno = 328 (0x148), region = 28  ;;  %s986_s4 = sand.u32 (!%p925_p8), 1, %s831_s10  }
  0x36   : > { %s533_s7 = sshll.u32 (!%p925_p8), %s986_s4, 2  ;;  %s163_s8 = scalar_lea.sflag (!%p925_p8), [#allocation4], %s986_s4 }
  0x37   : > { %s992_s16 = scalar_lea.vmem (!%p925_p8), [#allocation3], %s533_s7  ;;  %p1058_p12 = scmp.ne.s32.totalorder (!%p925_p8), %s1051_s19, 0 }
  0x3a   : > { %814 = dma.done.wait (%p1058_p12), %s163_s8, 64  }
  0x3b   : > { %816 = vsyncadd (%p1058_p12), %s163_s8, 4294967232 }
  0x3c   : > { %818 = dma.done.wait (%p905_p1), [#allocation7], 2048  }
  0x3d   : > { %820 = vsyncadd (%p905_p1), [#allocation7], 4294965248  ;;  %v853_v0 = vmov 0.0   ;;  %vm854_vm0 = vmmov 0   ;;  %v691_v1 = vld [vmem:[#allocation6 + $0x38] sm:$0xff]   ;;  %v693_v3 = vld [vmem:[#allocation6 + $0x30] sm:$0xff]   ;;  %v406_v18 = vlaneseq }
  0x3e   : > { %574 = vmatprep.subr.bf16.mxu0 %v853_v0  ;;  %594 = vmatprep.subr.bf16.mxu1 %v853_v0  ;;  %v692_v2 = vld [vmem:[#allocation6 + $0x78] sm:$0xff]   ;;  %v694_v4 = vld [vmem:[#allocation6 + $0x70] sm:$0xff]   ;;  %v695_v5 = vld [vmem:[#allocation6 + $0x28] sm:$0xff]   ;;  %s553_s17 = sshll.u32 %s839_s12, 6  ;;  %s190_s19 = scalar_lea.vmem [#allocation8], %s533_s7 }
  0x3f   : > { %590 = vmatprep.mubr.msk.bf16.mxu0 %vm854_vm0, %v853_v0  ;;  %610 = vmatprep.mubr.msk.bf16.mxu1 %vm854_vm0, %v853_v0  ;;  %v696_v6 = vld [vmem:[#allocation6 + $0x68] sm:$0xff]   ;;  %v697_v7 = vld [vmem:[#allocation6 + $0x20] sm:$0xff]   ;;  %v699_v9 = vld [vmem:[#allocation6 + $0x18] sm:$0xff]   ;;  %v407_v19 = vshrl.u32 %v406_v18, 7  ;;  %s435_s21 = sshll.u32 %s190_s19, 4  ;;  %s433_s24 = scalar_lea.hbm %s1047_s2, %s553_s17  ;;  %s436_s21 = int_to_ptr.vmem [resolvable:$true] %s435_s21 }
  0x40   : > { %575 = vmatpush3.bf16.msra.mxu0 %v691_v1  ;;  %595 = vmatpush3.bf16.msra.mxu1 %v692_v2  ;;  %v698_v8 = vld [vmem:[#allocation6 + $0x60] sm:$0xff]   ;;  %v700_v10 = vld [vmem:[#allocation6 + $0x58] sm:$0xff]   ;;  %v701_v11 = vld [vmem:[#allocation6 + $0x10] sm:$0xff]   ;;  %s421_s26 = scalar_lea.sflag [#allocation5], %s986_s4  ;;  %s763_s27 = scalar_lea.vmem %s436_s21, 64 }
  0x41   : > { %576 = vmatprep.subr.bf16.mxu0 %v853_v0  ;;  %596 = vmatprep.subr.bf16.mxu1 %v853_v0  ;;  %v702_v12 = vld [vmem:[#allocation6 + $0x50] sm:$0xff]   ;;  %v703_v13 = vld [vmem:[#allocation6 + $0x8] sm:$0xff]   ;;  %v705_v15 = vld [vmem:[#allocation6] sm:$0xff]   ;;  %vm409_vm1 = vcmp.ge.s32.totalorder %v407_v19, 7  ;;  %p764_p1 = scmp.ne.s32.totalorder %s436_s21, %s763_s27  ;;  %s855_s18 = smov [#allocation8]  }
  0x42   : > { %v704_v14 = vld [vmem:[#allocation6 + $0x48] sm:$0xff]   ;;  %v706_v16 = vld [vmem:[#allocation6 + $0x40] sm:$0xff]   ;;  %v197_v17 = vld [vmem:[%s992_s16] sm:$0xf]  ;;  %s767_s28 = sshll.u32 %s855_s18, 4  ;;  %s768_s28 = int_to_ptr.vmem [resolvable:$false] %s767_s28 }
  0x43   : > { %p765_p8 = pnand %p764_p1, %p958_p13  ;;  %s769_s12 = scalar_lea.vmem %s768_s28, 128 }
  0x44   : > { %577 = vmatpush3.bf16.msra.mxu0 %v693_v3  ;;  %597 = vmatpush3.bf16.msra.mxu1 %v694_v4  ;;  %p770_p0 = scmp.lt.s32.totalorder %s436_s21, %s768_s28  ;;  %p771_p2 = scmp.lt.s32.totalorder %s769_s12, %s763_s27 }
  0x45   : > { %578 = vmatprep.subr.bf16.mxu0 %v853_v0  ;;  %598 = vmatprep.subr.bf16.mxu1 %v853_v0  ;;  %p766_p10 = pneg %p765_p8 }
  0x46   : > { %p772_p3 = por %p771_p2, %p770_p0 }
  0x48   : > { %579 = vmatpush3.bf16.msra.mxu0 %v695_v5  ;;  %599 = vmatpush3.bf16.msra.mxu1 %v696_v6  ;;  %p773_p5 = pnand %p772_p3, %p766_p10 }
  0x49   : > { %580 = vmatprep.subr.bf16.mxu0 %v853_v0  ;;  %600 = vmatprep.subr.bf16.mxu1 %v853_v0 }
  0x4c   : > { %581 = vmatpush3.bf16.msra.mxu0 %v697_v7  ;;  %601 = vmatpush3.bf16.msra.mxu1 %v698_v8 }
  0x4d   : > { %582 = vmatprep.subr.bf16.mxu0 %v853_v0  ;;  %602 = vmatprep.subr.bf16.mxu1 %v853_v0 }
  0x50   : > { %583 = vmatpush3.bf16.msra.mxu0 %v699_v9  ;;  %603 = vmatpush3.bf16.msra.mxu1 %v700_v10 }
  0x51   : > { %584 = vmatprep.subr.bf16.mxu0 %v853_v0  ;;  %604 = vmatprep.subr.bf16.mxu1 %v853_v0 }
  0x54   : > { %585 = vmatpush3.bf16.msra.mxu0 %v701_v11  ;;  %605 = vmatpush3.bf16.msra.mxu1 %v702_v12 }
  0x55   : > { %586 = vmatprep.subr.bf16.mxu0 %v853_v0  ;;  %606 = vmatprep.subr.bf16.mxu1 %v853_v0 }
  0x58   : > { %587 = vmatpush3.bf16.msra.mxu0 %v703_v13  ;;  %607 = vmatpush3.bf16.msra.mxu1 %v704_v14 }
  0x59   : > { %588 = vmatprep.subr.bf16.mxu0 %v853_v0  ;;  %608 = vmatprep.subr.bf16.mxu1 %v853_v0 }
  0x5c   : > { %589 = vmatpush3.bf16.msra.mxu0 %v705_v15  ;;  %609 = vmatpush3.bf16.msra.mxu1 %v706_v16 }
  0x5f   : > { %591 = vmatmul.mubr.bf16.vlgmr.msra.gmra.mxu0 %v197_v17  ;;  %611 = vmatmul.mubr.bf16.vlgmr.msra.gmra.mxu1 %v197_v17 }
 0x11f   : > { %v312_v20 = vpop.f32.mrf.mxu0  ;;  %v400_v22 = vpop.f32.mrf.mxu1 }
 0x120   : > { %v410_v21 = vsel %vm409_vm1, 0.0, %v312_v20 }
 0x121   : > { %v411_v23 = vrot.slane %v410_v21, 7  ;;  %v592_v24 = vpop.f32.mrf.mxu0  ;;  %v612_v25 = vpop.f32.mrf.mxu1 }
 0x123   : > { %v413_v26 = vadd.f32 %v411_v23, %v400_v22  ;;  %v315_v27 = vpop.f32.mrf.mxu0  ;;  %v403_v28 = vpop.f32.mrf.mxu1 }
 0x125   : > { %v414_v29 = vmul.f32 0.5, %v413_v26  ;;  %v593_v30 = vpop.f32.mrf.mxu0  ;;  %v613_v31 = vpop.f32.mrf.mxu1 }
 0x127   : > { %707 = vtanh.f32 %v414_v29 }
 0x134   : > { %v708_v32 = vpop.eup %707 }
 0x135   : > { %v416_v33 = vadd.f32 1.0, %v708_v32 }
 0x137   : > { %v417_v34 = vmul.f32 0.5, %v416_v33 }
 0x139   : > { %v418_v35 = vpack.c.bf16 %v417_v34, %v417_v34 }
 0x13b   : > { %419 = vst [vmem:[%s190_s19] sm:$0xf] %v418_v35 }
 0x13c   : > { %776 = shalt.err (!%p773_p5)
}
 0x13d   : > { %s777_s29 = scalar_lea.hbm %s433_s24, 64  ;;  %s781_s6 = scalar_lea.hbm %s1047_s2, 128 }
 0x13e   : > { %p778_p7 = scmp.ne.s32.totalorder %s433_s24, %s777_s29  ;;  %p782_p9 = scmp.lt.s32.totalorder %s433_s24, %s1047_s2 }
 0x13f   : > { %p783_p11 = scmp.lt.s32.totalorder %s781_s6, %s777_s29 }
 0x140   : > { %p779_p6 = pnand %p778_p7, %p958_p13 }
 0x141   : > { %p784_p12 = por %p783_p11, %p782_p9 }
 0x142   : > { %p780_p4 = pneg %p779_p6 }
 0x144   : > { %p785_p1 = pnand %p784_p12, %p780_p4 }
 0x146   : > { %788 = shalt.err (!%p785_p1)
}
 0x147   : > { %620 = dma.vmem_to_hbm [thread:$0]  (%p958_p13), %s436_s21, 64, %s433_s24, %s421_s26  }
 0x148 PF: > { %s447_s8 = sand.u32 1, %s827_s9   ;;  %p1059_p8 = scmp.ne.s32.totalorder %s1052_s20, 0 }
 0x149   : > { %p1060_p10 = scmp.ge.s32.totalorder %s847_s14, 2  ;;  %s448_s16 = scalar_lea.sflag [#allocation5], %s447_s8 }
 0x14b   : > { %p631_p0 = pnand %p1060_p10, %p1059_p8 }
 0x14d   : > { %p632_p2 = pneg %p631_p0 }
 0x14f   : > { %822 = dma.done.wait (%p632_p2), %s448_s16, 64  }
 0x150   : > { %824 = vsyncadd (%p632_p2), %s448_s16, 4294967232  ;;  %s19_s14 = sadd.s32 1, %s847_s14   ;;  %s1061_s9 = smov %s831_s10 }
 0x151   : > { %p16_p3 = scmp.ge.s32.totalorder %s19_s14, 4   ;;  %s1062_s10 = smov %s835_s11 }
 0x152   : > { %s1063_s11 = smov %s967_s15  ;;  %s1064_s12 = smov %s843_s13 }
 0x153   : > { %s1065_s13 = smov %s1067_s25  ;;  %18 = sbr.rel (!%p16_p3) target bundleno = 7 (0x7), region = 81 }
 0x158   :  { %453 = vsyncpa [#allocation4], 1 }
 0x159   :  { %455 = vsyncpa [#allocation4 + $0x1], 1 }
 0x15a   :  { %456 = vsyncpa [#allocation7], 1 }
 0x15b   :  { %457 = vsyncpa [#allocation5], 1 }
 0x15c   :  { %459 = vsyncpa [#allocation5 + $0x1], 1 }

</bundles_post_ra>
